<compile_context>
chip_gen: v5e
topology: v5e:2x2
jax: 0.10.0
libtpu: 0.0.40
codegen_flags: <defaults>
</compile_context>

<pallas_src>
import jax
import jax.numpy as jnp
from jax.experimental import pallas as pl
from jax.experimental.pallas import tpu as pltpu


def _round_up(x, m):
    return (x + m - 1) // m * m


# ----------------------------------------------------------------------------
# Fused ConvNet kernel (all ConvBlocks in one pallas_call body)
# ----------------------------------------------------------------------------
def _make_fused_kernel(num_layers, res_kinds, K, pad, L, c_out_final):
    """res_kinds: static per-layer tuple of 'proj' | 'identity' | 'none'."""

    def kernel(x_ref, w_ref, b_ref, r_ref, rb_ref, out_ref, act_ref):
        # act_ref: (C_pad, L + 2*pad) f32 VMEM scratch, resident across all layers.
        # Zero it once: the pad columns are never written again, so every layer
        # sees correct zero padding for free.
        act_ref[...] = jnp.zeros_like(act_ref)
        act_ref[:, pad:pad + L] = x_ref[0].astype(jnp.float32)

        for l in range(num_layers):                       # static, unrolled
            xp = act_ref[...]                             # (C_pad, Lp) f32

            # im2col: stack the K shifted slices once, then one MXU matmul.
            col = jnp.concatenate([xp[:, t:t + L] for t in range(K)], axis=0)
            y = jnp.dot(w_ref[l], col, preferred_element_type=jnp.float32)
            y = jnp.maximum(y + b_ref[l], 0.0)            # bias + ReLU (f32)

            kind = res_kinds[l]
            if kind == "proj":                            # 1x1 down-sample residual
                y = y + jnp.dot(r_ref[l], xp[:, pad:pad + L],
                                preferred_element_type=jnp.float32) + rb_ref[l]
            elif kind == "identity":                      # identity residual
                y = y + xp[:, pad:pad + L]

            if l + 1 < num_layers:
                act_ref[:, pad:pad + L] = y               # stays in VMEM
            else:
                out_ref[0] = y[0:c_out_final].astype(out_ref.dtype)

    return kernel


# ----------------------------------------------------------------------------
# Wrapper: one pallas_call for the whole network, grid over batch
# ----------------------------------------------------------------------------
def convnet_forward(x, params, *, compute_dtype=jnp.float32):
    """x: (N, C_in, L). params: list of per-block dicts from init_convnet_params."""
    N, c_in0, L = x.shape
    num_layers = len(params)
    K = params[0]["w"].shape[-1]
    pad = params[0]["padding"]

    # Supported-config guards (see correctness review).
    for p in params:
        assert p["dilation"] == 1, "TODO(synk): dilated tap offsets not implemented"
        assert p["w"].shape[-1] == K and p["padding"] == pad, \
            "fused kernel assumes all blocks share kernel_size / padding"
    assert K % 2 == 1 and pad == (K - 1) // 2, \
        "output length == input length requires odd kernel_size with 'same' padding"

    c_out_final = params[-1]["w"].shape[0]
    c_max = max([c_in0] + [p["w"].shape[0] for p in params])
    C = _round_up(max(c_max, 8), 8)                 # pad channels to sublane multiple
    Lp = L + 2 * pad

    # Stack + zero-pad all layer parameters to a common channel count C.
    w_l, b_l, r_l, rb_l, kinds = [], [], [], [], []
    for p in params:
        c_out, c_in, _ = p["w"].shape
        w_pad = jnp.zeros((C, C, K), jnp.float32).at[:c_out, :c_in, :].set(p["w"])
        # im2col weight: w2[o, t*C + c] = w[o, c, t]  (matches kernel concat order)
        w_l.append(jnp.transpose(w_pad, (0, 2, 1)).reshape(C, K * C))
        b_l.append(jnp.zeros((C, 1), jnp.float32).at[:c_out, 0].set(p["b"]))

        if p["dw"] is not None:                     # 1x1 down-sample residual
            r = jnp.zeros((C, C), jnp.float32).at[:c_out, :c_in].set(p["dw"][:, :, 0])
            rb = jnp.zeros((C, 1), jnp.float32).at[:c_out, 0].set(p["db"])
            kinds.append("proj")
        else:
            r = jnp.zeros((C, C), jnp.float32)
            rb = jnp.zeros((C, 1), jnp.float32)
            if p["residual"]:
                assert c_in == c_out, "identity residual requires c_in == c_out"
                kinds.append("identity")
            else:
                kinds.append("none")
        r_l.append(r)
        rb_l.append(rb)

    w_all = jnp.stack(w_l).astype(compute_dtype)    # (NL, C, K*C)
    r_all = jnp.stack(r_l).astype(compute_dtype)    # (NL, C, C)
    b_all = jnp.stack(b_l)                          # (NL, C, 1)  f32
    rb_all = jnp.stack(rb_l)                        # (NL, C, 1)  f32

    # One-time channel pad of the network input (keeps in-kernel stores
    # full-sublane); activations never return to HBM after this point.
    x_in = jnp.pad(x, ((0, 0), (0, C - c_in0), (0, 0))).astype(compute_dtype)

    kernel = _make_fused_kernel(num_layers, tuple(kinds), K, pad, L, c_out_final)

    return pl.pallas_call(
        kernel,
        out_shape=jax.ShapeDtypeStruct((N, c_out_final, L), x.dtype),
        grid=(N,),
        in_specs=[
            pl.BlockSpec((1, C, L), lambda n: (n, 0, 0)),                 # x
            pl.BlockSpec((num_layers, C, K * C), lambda n: (0, 0, 0)),    # conv weights
            pl.BlockSpec((num_layers, C, 1), lambda n: (0, 0, 0)),        # conv biases
            pl.BlockSpec((num_layers, C, C), lambda n: (0, 0, 0)),        # residual proj
            pl.BlockSpec((num_layers, C, 1), lambda n: (0, 0, 0)),        # residual bias
        ],
        out_specs=pl.BlockSpec((1, c_out_final, L), lambda n: (n, 0, 0)),
        scratch_shapes=[pltpu.VMEM((C, Lp), jnp.float32)],
        compiler_params=pltpu.CompilerParams(dimension_semantics=("parallel",)),
    )(x_in, w_all, b_all, r_all, rb_all)


# ----------------------------------------------------------------------------
# Parameter construction (deterministic, mirrors ConvNet.__init__ shapes)
# ----------------------------------------------------------------------------
def _kaiming_uniform(key, shape, fan_in):
    bound = jnp.sqrt(2.0) * jnp.sqrt(3.0 / fan_in)    # gain(relu) * sqrt(3/fan_in)
    return jax.random.uniform(key, shape, jnp.float32, minval=-bound, maxval=bound)


def init_convnet_params(key, channels, kernel_size=3, dilated=False, residual=True):
    params = []
    num_levels = len(channels) - 1
    for i in range(num_levels):
        c_in, c_out = channels[i], channels[i + 1]
        dilation = kernel_size ** i if dilated else 1
        padding = (kernel_size - 1) // 2 * dilation
        key, kv, kg, kd = jax.random.split(key, 4)

        v = _kaiming_uniform(kv, (c_out, c_in, kernel_size), c_in * kernel_size)
        g = jax.random.uniform(kg, (c_out,), jnp.float32, minval=0.5, maxval=1.5)
        # weight_norm: w = g * v / ||v||  (norm per output channel, dims (1, 2))
        norm = jnp.sqrt(jnp.sum(v * v, axis=(1, 2), keepdims=True))
        w_eff = g[:, None, None] * v / norm
        b = jnp.zeros((c_out,), jnp.float32)          # bias.fill_(0)

        needs_down = residual and (c_in != c_out)
        if needs_down:
            dw = _kaiming_uniform(kd, (c_out, c_in, 1), c_in)
            db = jnp.zeros((c_out,), jnp.float32)
        else:
            dw, db = None, None

        params.append(dict(w=w_eff, b=b, dw=dw, db=db, residual=residual,
                           padding=padding, dilation=dilation))
    return params


# ----------------------------------------------------------------------------
# Pure-JAX reference (for correctness check)
# ----------------------------------------------------------------------------
def _ref_conv1d(x, w, b, padding):
    y = jax.lax.conv_general_dilated(
        x, w, window_strides=(1,), padding=[(padding, padding)],
        dimension_numbers=("NCH", "OIH", "NCH"))
    return y + b[None, :, None]


def ref_forward(x, params):
    out = x
    for p in params:
        y = jnp.maximum(_ref_conv1d(out, p["w"], p["b"], p["padding"]), 0.0)
        if p["dw"] is not None:
            y = y + _ref_conv1d(out, p["dw"], p["db"], 0)
        elif p["residual"]:
            y = y + out
        out = y
    return out


# ----------------------------------------------------------------------------
if __name__ == "__main__":
    key = jax.random.PRNGKey(0)
    k_x, k_p = jax.random.split(key)

    channels = [4, 8, 8]   # block 0: 4->8 (1x1 down-sample residual); block 1: 8->8 (identity)
    N, L = 2, 16
    x = jax.random.normal(k_x, (N, channels[0], L), jnp.float32)

    params = init_convnet_params(k_p, channels, kernel_size=3,
                                 dilated=False, residual=True)

    ref = jax.block_until_ready(ref_forward(x, params))

    # f32 end-to-end
    out = jax.block_until_ready(convnet_forward(x, params))
    assert out.shape == (N, channels[-1], L), out.shape
    assert jnp.allclose(out, ref, atol=1e-4, rtol=1e-4), \
        f"max abs err = {jnp.max(jnp.abs(out - ref))}"

    # bf16 storage for x / weights (halved DMA traffic), f32 accumulation in-kernel
    out_bf16 = jax.block_until_ready(
        convnet_forward(x, params, compute_dtype=jnp.bfloat16))
    assert jnp.allclose(out_bf16, ref, atol=1e-1, rtol=1e-1), \
        f"bf16 max abs err = {jnp.max(jnp.abs(out_bf16 - ref))}"

    print("KERNEL_OK")
</pallas_src>

<mosaic_0001>
module attributes {stable_mosaic.version = 11 : i64} {
  func.func @kernel(%arg0: i32, %arg1: memref<1x8x16xf32, #tpu.memory_space<vmem>>, %arg2: memref<2x8x24xf32, #tpu.memory_space<vmem>>, %arg3: memref<2x8x1xf32, #tpu.memory_space<vmem>>, %arg4: memref<2x8x8xf32, #tpu.memory_space<vmem>>, %arg5: memref<2x8x1xf32, #tpu.memory_space<vmem>>, %arg6: memref<1x8x16xf32, #tpu.memory_space<vmem>>, %arg7: memref<8x18xf32, #tpu.memory_space<vmem>>) attributes {dimension_semantics = [#tpu.dimension_semantics<parallel>], iteration_bounds = array<i64: 2>, scalar_prefetch = 0 : i64, scratch_operands = 1 : i64, tpu.core_type = #tpu.core_type<tc>, window_params = [{transform_indices = @transform_0, window_bounds = array<i64: 1, 8, 16>}, {pipeline_mode = #tpu.pipeline_mode<synchronous>, transform_indices = @transform_1, window_bounds = array<i64: 2, 8, 24>}, {pipeline_mode = #tpu.pipeline_mode<synchronous>, transform_indices = @transform_2, window_bounds = array<i64: 2, 8, 1>}, {pipeline_mode = #tpu.pipeline_mode<synchronous>, transform_indices = @transform_3, window_bounds = array<i64: 2, 8, 8>}, {pipeline_mode = #tpu.pipeline_mode<synchronous>, transform_indices = @transform_4, window_bounds = array<i64: 2, 8, 1>}, {transform_indices = @transform_5, window_bounds = array<i64: 1, 8, 16>}]} {
    %cst = arith.constant 0.000000e+00 : f32
    %0 = vector.broadcast %cst : f32 to vector<8x18xf32>
    %c0 = arith.constant 0 : index
    %c0_0 = arith.constant 0 : index
    %1 = vector.load %arg7[%c0, %c0_0] : memref<8x18xf32, #tpu.memory_space<vmem>>, vector<8x18xf32>
    tpu.vector_store %arg7[%c0, %c0_0], %0 {strides = array<i32>} : memref<8x18xf32, #tpu.memory_space<vmem>>, vector<8x18xf32>,
    %c0_1 = arith.constant 0 : index
    %c0_2 = arith.constant 0 : index
    %c0_3 = arith.constant 0 : index
    %2 = vector.load %arg1[%c0_1, %c0_2, %c0_3] : memref<1x8x16xf32, #tpu.memory_space<vmem>>, vector<1x8x16xf32>
    %3 = vector.shape_cast %2 : vector<1x8x16xf32> to vector<8x16xf32>
    %c0_4 = arith.constant 0 : index
    %c1 = arith.constant 1 : index
    %4 = vector.load %arg7[%c0_4, %c1] : memref<8x18xf32, #tpu.memory_space<vmem>>, vector<8x16xf32>
    tpu.vector_store %arg7[%c0_4, %c1], %3 {strides = array<i32>} : memref<8x18xf32, #tpu.memory_space<vmem>>, vector<8x16xf32>,
    %c0_5 = arith.constant 0 : index
    %c0_6 = arith.constant 0 : index
    %5 = vector.load %arg7[%c0_5, %c0_6] : memref<8x18xf32, #tpu.memory_space<vmem>>, vector<8x18xf32>
    %6 = vector.extract_strided_slice %5 {offsets = [0, 0], sizes = [8, 16], strides = [1, 1]} : vector<8x18xf32> to vector<8x16xf32>
    %7 = vector.extract_strided_slice %5 {offsets = [0, 1], sizes = [8, 16], strides = [1, 1]} : vector<8x18xf32> to vector<8x16xf32>
    %8 = vector.extract_strided_slice %5 {offsets = [0, 2], sizes = [8, 16], strides = [1, 1]} : vector<8x18xf32> to vector<8x16xf32>
    %9 = tpu.concatenate %6, %7, %8 in 0 : vector<8x16xf32>, vector<8x16xf32>, vector<8x16xf32> -> vector<24x16xf32>
    %c0_7 = arith.constant 0 : index
    %c0_8 = arith.constant 0 : index
    %c0_9 = arith.constant 0 : index
    %10 = vector.load %arg2[%c0_7, %c0_8, %c0_9] : memref<2x8x24xf32, #tpu.memory_space<vmem>>, vector<1x8x24xf32>
    %11 = vector.shape_cast %10 : vector<1x8x24xf32> to vector<8x24xf32>
    %cst_10 = arith.constant dense<0.000000e+00> : vector<8x16xf32>
    %12 = tpu.matmul %11, %9, %cst_10 {dimension_numbers = #tpu.dot_dimension_numbers<[1], [0], [0], [1], [0, 0, 1, 1], [], []>} : vector<8x24xf32>, vector<24x16xf32>, vector<8x16xf32> -> vector<8x16xf32>
    %c0_11 = arith.constant 0 : index
    %c0_12 = arith.constant 0 : index
    %c0_13 = arith.constant 0 : index
    %13 = vector.load %arg3[%c0_11, %c0_12, %c0_13] : memref<2x8x1xf32, #tpu.memory_space<vmem>>, vector<1x8x1xf32>
    %14 = vector.shape_cast %13 : vector<1x8x1xf32> to vector<8x1xf32>
    %15 = vector.broadcast %14 : vector<8x1xf32> to vector<8x16xf32>
    %16 = arith.addf %12, %15 : vector<8x16xf32>
    %cst_14 = arith.constant 0.000000e+00 : f32
    %17 = vector.broadcast %cst_14 : f32 to vector<8x16xf32>
    %18 = arith.maximumf %16, %17 : vector<8x16xf32>
    %c0_15 = arith.constant 0 : index
    %c0_16 = arith.constant 0 : index
    %c0_17 = arith.constant 0 : index
    %19 = vector.load %arg4[%c0_15, %c0_16, %c0_17] : memref<2x8x8xf32, #tpu.memory_space<vmem>>, vector<1x8x8xf32>
    %20 = vector.shape_cast %19 : vector<1x8x8xf32> to vector<8x8xf32>
    %21 = vector.extract_strided_slice %5 {offsets = [0, 1], sizes = [8, 16], strides = [1, 1]} : vector<8x18xf32> to vector<8x16xf32>
    %cst_18 = arith.constant dense<0.000000e+00> : vector<8x16xf32>
    %22 = tpu.matmul %20, %21, %cst_18 {dimension_numbers = #tpu.dot_dimension_numbers<[1], [0], [0], [1], [0, 0, 1, 1], [], []>} : vector<8x8xf32>, vector<8x16xf32>, vector<8x16xf32> -> vector<8x16xf32>
    %23 = arith.addf %18, %22 : vector<8x16xf32>
    %c0_19 = arith.constant 0 : index
    %c0_20 = arith.constant 0 : index
    %c0_21 = arith.constant 0 : index
    %24 = vector.load %arg5[%c0_19, %c0_20, %c0_21] : memref<2x8x1xf32, #tpu.memory_space<vmem>>, vector<1x8x1xf32>
    %25 = vector.shape_cast %24 : vector<1x8x1xf32> to vector<8x1xf32>
    %26 = vector.broadcast %25 : vector<8x1xf32> to vector<8x16xf32>
    %27 = arith.addf %23, %26 : vector<8x16xf32>
    %c0_22 = arith.constant 0 : index
    %c1_23 = arith.constant 1 : index
    %28 = vector.load %arg7[%c0_22, %c1_23] : memref<8x18xf32, #tpu.memory_space<vmem>>, vector<8x16xf32>
    tpu.vector_store %arg7[%c0_22, %c1_23], %27 {strides = array<i32>} : memref<8x18xf32, #tpu.memory_space<vmem>>, vector<8x16xf32>,
    %c0_24 = arith.constant 0 : index
    %c0_25 = arith.constant 0 : index
    %29 = vector.load %arg7[%c0_24, %c0_25] : memref<8x18xf32, #tpu.memory_space<vmem>>, vector<8x18xf32>
    %30 = vector.extract_strided_slice %29 {offsets = [0, 0], sizes = [8, 16], strides = [1, 1]} : vector<8x18xf32> to vector<8x16xf32>
    %31 = vector.extract_strided_slice %29 {offsets = [0, 1], sizes = [8, 16], strides = [1, 1]} : vector<8x18xf32> to vector<8x16xf32>
    %32 = vector.extract_strided_slice %29 {offsets = [0, 2], sizes = [8, 16], strides = [1, 1]} : vector<8x18xf32> to vector<8x16xf32>
    %33 = tpu.concatenate %30, %31, %32 in 0 : vector<8x16xf32>, vector<8x16xf32>, vector<8x16xf32> -> vector<24x16xf32>
    %c1_26 = arith.constant 1 : index
    %c0_27 = arith.constant 0 : index
    %c0_28 = arith.constant 0 : index
    %34 = vector.load %arg2[%c1_26, %c0_27, %c0_28] : memref<2x8x24xf32, #tpu.memory_space<vmem>>, vector<1x8x24xf32>
    %35 = vector.shape_cast %34 : vector<1x8x24xf32> to vector<8x24xf32>
    %cst_29 = arith.constant dense<0.000000e+00> : vector<8x16xf32>
    %36 = tpu.matmul %35, %33, %cst_29 {dimension_numbers = #tpu.dot_dimension_numbers<[1], [0], [0], [1], [0, 0, 1, 1], [], []>} : vector<8x24xf32>, vector<24x16xf32>, vector<8x16xf32> -> vector<8x16xf32>
    %c1_30 = arith.constant 1 : index
    %c0_31 = arith.constant 0 : index
    %c0_32 = arith.constant 0 : index
    %37 = vector.load %arg3[%c1_30, %c0_31, %c0_32] : memref<2x8x1xf32, #tpu.memory_space<vmem>>, vector<1x8x1xf32>
    %38 = vector.shape_cast %37 : vector<1x8x1xf32> to vector<8x1xf32>
    %39 = vector.broadcast %38 : vector<8x1xf32> to vector<8x16xf32>
    %40 = arith.addf %36, %39 : vector<8x16xf32>
    %cst_33 = arith.constant 0.000000e+00 : f32
    %41 = vector.broadcast %cst_33 : f32 to vector<8x16xf32>
    %42 = arith.maximumf %40, %41 : vector<8x16xf32>
    %43 = vector.extract_strided_slice %29 {offsets = [0, 1], sizes = [8, 16], strides = [1, 1]} : vector<8x18xf32> to vector<8x16xf32>
    %44 = arith.addf %42, %43 : vector<8x16xf32>
    %c0_34 = arith.constant 0 : index
    %c0_35 = arith.constant 0 : index
    %c0_36 = arith.constant 0 : index
    %45 = vector.load %arg6[%c0_34, %c0_35, %c0_36] : memref<1x8x16xf32, #tpu.memory_space<vmem>>, vector<1x8x16xf32>
    %46 = vector.shape_cast %45 : vector<1x8x16xf32> to vector<8x16xf32>
    %47 = vector.shape_cast %44 : vector<8x16xf32> to vector<1x8x16xf32>
    tpu.vector_store %arg6[%c0_34, %c0_35, %c0_36], %47 {strides = array<i32>} : memref<1x8x16xf32, #tpu.memory_space<vmem>>, vector<1x8x16xf32>,
    return
  }
  func.func @transform_0(%arg0: i32) -> (i32, i32, i32) {
    %c0_i32 = arith.constant 0 : i32
    %c0_i32_0 = arith.constant 0 : i32
    %c0_i32_1 = arith.constant 0 : i32
    return %arg0, %c0_i32, %c0_i32_0 : i32, i32, i32
  }
  func.func @transform_1(%arg0: i32) -> (i32, i32, i32) {
    %c0_i32 = arith.constant 0 : i32
    %c0_i32_0 = arith.constant 0 : i32
    %c0_i32_1 = arith.constant 0 : i32
    %c0_i32_2 = arith.constant 0 : i32
    return %c0_i32, %c0_i32_0, %c0_i32_1 : i32, i32, i32
  }
  func.func @transform_2(%arg0: i32) -> (i32, i32, i32) {
    %c0_i32 = arith.constant 0 : i32
    %c0_i32_0 = arith.constant 0 : i32
    %c0_i32_1 = arith.constant 0 : i32
    %c0_i32_2 = arith.constant 0 : i32
    return %c0_i32, %c0_i32_0, %c0_i32_1 : i32, i32, i32
  }
  func.func @transform_3(%arg0: i32) -> (i32, i32, i32) {
    %c0_i32 = arith.constant 0 : i32
    %c0_i32_0 = arith.constant 0 : i32
    %c0_i32_1 = arith.constant 0 : i32
    %c0_i32_2 = arith.constant 0 : i32
    return %c0_i32, %c0_i32_0, %c0_i32_1 : i32, i32, i32
  }
  func.func @transform_4(%arg0: i32) -> (i32, i32, i32) {
    %c0_i32 = arith.constant 0 : i32
    %c0_i32_0 = arith.constant 0 : i32
    %c0_i32_1 = arith.constant 0 : i32
    %c0_i32_2 = arith.constant 0 : i32
    return %c0_i32, %c0_i32_0, %c0_i32_1 : i32, i32, i32
  }
  func.func @transform_5(%arg0: i32) -> (i32, i32, i32) {
    %c0_i32 = arith.constant 0 : i32
    %c0_i32_0 = arith.constant 0 : i32
    %c0_i32_1 = arith.constant 0 : i32
    return %arg0, %c0_i32, %c0_i32_0 : i32, i32, i32
  }
}

</mosaic_0001>

<bundles_post_ra>
// kernel: tpu_custom_call.1
= control target key start
LH: loop header
LB: loop body
LE: loop exit
PB: predicated region body
PF: predicated region fallthrough
CT: control target
= control target key end

     0   :  { %10 = vsyncpa [#allocation4], 0  ;;  %s788_s0 = inlined_call_operand.vmem [shape: f32[2,8,16], index: 0, kind: input, shape index: {}]   ;;  %s789_s1 = inlined_call_operand.vmem [shape: f32[2,8,24], index: 1, kind: input, shape index: {}]   ;;  %s790_s2 = inlined_call_operand.vmem [shape: f32[2,8,1], index: 2, kind: input, shape index: {}]   ;;  %s791_s3 = inlined_call_operand.hbm [shape: f32[2,8,8], index: 3, kind: input, shape index: {}]   ;;  %s792_s4 = inlined_call_operand.vmem [shape: f32[2,8,1], index: 4, kind: input, shape index: {}]   ;;  %s793_s5 = inlined_call_operand.hbm [shape: f32[2,8,16], index: 5, kind: output, shape index: {}]  }
   0x1   :  { %11 = vsyncpa [#allocation5], 0 }
   0x2   :  { %13 = vsyncpa [#allocation5 + $0x1], 0  ;;  %s668_s18 = smov 0   ;;  %s670_s19 = smov 0  }
   0x3   :  { %s672_s20 = smov 0   ;;  %s674_s21 = smov 0  }
   0x4 LB: > { %s689_s22 = sadd.s32 4294967295, %s628_s21   ;;  %s455_s23 = sadd.s32 4294967294, %s628_s21   ;;  %s628_s21 = sphi %s674_s21, %s799_s21   ;;  %s624_s20 = sphi %s672_s20, %s798_s20   ;;  %s620_s19 = sphi %s670_s19, %s797_s19   ;;  %s616_s18 = sphi %s668_s18, %s796_s18  }
   0x5   : > { %s693_s24 = sadd.s32 1, %s628_s21   ;;  %s136_s25 = sadd.s32 1, %s624_s20 }
   0x6   : > { %s133_s26 = ssub.s32 %s628_s21, %s693_s24  ;;  %p146_p0 = scmp.ne.s32.totalorder %s624_s20, %s620_s19 }
   0x7   : > { %p134_p1 = scmp.eq.s32.totalorder %s133_s26, 0  ;;  %p147_p2 = scmp.eq.s32.totalorder %s689_s22, 1 }
   0x8   : > { %p152_p3 = scmp.ne.s32.totalorder %s620_s19, %s616_s18  ;;  %p153_p4 = scmp.eq.s32.totalorder %s455_s23, 1 }
   0x9   : > { %s704_s27 = scalar_select %p134_p1, %s624_s20, %s136_s25  }
   0xa   : > { %p706_p5 = por %p147_p2, %p146_p0  ;;  %p710_p6 = por %p153_p4, %p152_p3 }
   0xb   : > { %p456_p7 = scmp.ge.s32.totalorder %s628_s21, 1  ;;  %p160_p8 = scmp.lt.s32.totalorder %s628_s21, 3 }
   0xc   : > { %p486_p9 = scmp.eq.s32.totalorder %s689_s22, 0  ;;  %s177_s7 = sshll.u32 %s791_s3, 4  ;;  %s178_s7 = int_to_ptr.hbm [resolvable:$true] %s177_s7 }
   0xd   : > { %p161_p10 = pnand %p456_p7, %p160_p8  ;;  %s630_s8 = smov [#allocation3]  }
   0xe   : > { %s179_s9 = sshll.u32 %s630_s8, 4  ;;  %s631_s10 = smov 128   ;;  %s180_s9 = int_to_ptr.vmem [resolvable:$true] %s179_s9 }
   0xf   : > { %p478_p11 = pneg %p161_p10  ;;  %s632_s11 = smov 8  }
  0x10   : > { %205 = sbr.rel (%p161_p10) target bundleno = 766 (0x2fe), region = 40 }
  0x11   : > { %p479_p12 = pnand %p486_p9, %p478_p11 }
  0x13   : > { %481 = dma.hbm_to_vmem [thread:$0]  (!%p479_p12), %s178_s7, 256, %s180_s9, [#allocation4], %s631_s10, %s631_s10, %s632_s11  }
  0x15   : > { %607 = dma.done.wait (%p486_p9), [#allocation4], 256  }
  0x16   : > { %609 = vsyncadd (%p486_p9), [#allocation4], 4294967040  ;;  %p233_p13 = scmp.lt.s32.totalorder %s689_s22, 1  ;;  %vm237_vm0 = vcmask 146432   ;;  %v633_v0 = vmov 0.0   ;;  %s634_s17 = smov 1  }
  0x17   : > { %238 = vst.msk [vmem:[#allocation2] sm:$0xff] %vm237_vm0, %v633_v0  ;;  %vm244_vm1 = vcmask 138248   ;;  %s635_s23 = smov 127   ;;  %s636_s25 = smov 126   ;;  %v255_v4 = vld [vmem:[%s790_s2] sm:$0xff]  ;;  %v637_v6 = vmov 0  }
  0x18   : > { %s234_s12 = scalar_select %p233_p13, %s689_s22, 1  ;;  %v312_v5 = vld [vmem:[%s792_s4] sm:$0xff]  ;;  %529 = vset.pattern.permute.xlu1 %v637_v6  ;;  %530 = vset.pattern.permute.xlu2 %v637_v6  ;;  %v286_v7 = vld [vmem:[#allocation3] sm:$0xff]  ;;  %vm287_vm2 = vcmask 64512   ;;  %vm261_vm3 = vcmask 195584   ;;  %vm366_vm4 = vcmask 130048  }
  0x19   : > { %315 = vperm.xlu2 %530, %v312_v5   ;;  %531 = vset.pattern.permute.xlu0 %v637_v6  ;;  %v254_v10 = vld [vmem:[%s789_s1] sm:$0xff]  ;;  %v466_v19 = vld [vmem:[%s790_s2 + $0x8] sm:$0xff]  ;;  %s230_s14 = sand.u32 1, %s620_s19   ;;  %s582_s11 = scalar_lea.hbm %s793_s5, 16 }
  0x1a   : > { %s462_s13 = sshll.u32 %s234_s12, 3  ;;  %v465_v24 = vld [vmem:[%s789_s1 + $0x8] sm:$0xff]  ;;  %s461_s15 = sshll.u32 %s230_s14, 3 }
  0x1b   : > { %s236_s16 = scalar_lea.vmem %s788_s0, %s462_s13  ;;  %s369_s7 = scalar_lea.sflag [#allocation5], %s230_s14 }
  0x1c   : > { %v239_v1 = vld [vmem:[%s236_s16] sm:$0xff]  ;;  %s469_s16 = sshll.u32 %s689_s22, 3 }
  0x1d   : > { %241 = vrot.lane.b32.xlu0 %v239_v1, %s634_s17 }
  0x73   : > { %v316_v16 = vpop.permute.xlu2 %315 }
  0x8f   : > { %v242_v2 = vpop.permute.xlu0 %241 }
  0x90   : > { %245 = vst.msk [vmem:[#allocation2] sm:$0xff] %vm244_vm1, %v242_v2 }
  0x97   : > { %v246_v3 = vld [vmem:[#allocation2] sm:$0xff] }
  0x98   : > { %248 = vrot.lane.b32.xlu1 %v246_v3, %s635_s23  ;;  %251 = vrot.lane.b32.xlu0 %v246_v3, %s636_s25 }
  0xa0   : > { %258 = vperm.xlu1 %529, %v255_v4  }
 0x10a   : > { %v249_v8 = vpop.permute.xlu1 %248  ;;  %v252_v9 = vpop.permute.xlu0 %251 }
 0x10b   : > { %278 = vmatpush.msra.mxu0 %v252_v9  ;;  %306 = vmatpush.msra.mxu1 %v249_v8 }
 0x10c   : > { %464 = vmatmul.msk.f32.vlgmr.msra.gmra.mxu1 %vm287_vm2, %v286_v7 }
 0x10d   : > { %279 = vmatpush.msra.mxu0 %v249_v8 }
 0x10f   : > { %280 = vmatpush.msra.mxu0 %v246_v3 }
 0x110   : > { %463 = vmatmul.msk.f32.vlgmr.msra.gmra.mxu0 %vm261_vm3, %v254_v10 }
 0x112   : > { %v259_v11 = vpop.permute.xlu1 %258 }
 0x189   : > { %v308_v14 = vpop.f32.mrf.mxu1 }
 0x18d   : > { %v282_v12 = vpop.f32.mrf.mxu0 }
 0x18e   : > { %v283_v13 = vadd.f32 %v282_v12, %v259_v11 }
 0x190   : > { %v285_v15 = vmax.f32 %v283_v13, 0.0 }
 0x192   : > { %v311_v17 = vadd.f32 %v308_v14, %v285_v15 }
 0x194   : > { %v318_v18 = vadd.f32 %v316_v16, %v311_v17 }
 0x196   : > { %320 = vrot.lane.b32.xlu2 %v318_v18, %s634_s17 }
 0x19e   : > { %338 = vperm.xlu2 %530, %v466_v19  }
 0x1f0   : > { %v321_v20 = vpop.permute.xlu2 %320 }
 0x1f1   : > { %323 = vst.msk [vmem:[#allocation2] sm:$0xff] %vm244_vm1, %v321_v20 }
 0x1f8   : > { %v324_v21 = vld [vmem:[#allocation2] sm:$0xff]  ;;  %v339_v25 = vpop.permute.xlu2 %338 }
 0x1f9   : > { %326 = vrot.lane.b32.xlu1 %v324_v21, %s635_s23  ;;  %329 = vrot.lane.b32.xlu0 %v324_v21, %s636_s25  ;;  %s379_s23 = scalar_lea.hbm %s793_s5, %s469_s16  ;;  %s232_s25 = scalar_lea.vmem [#allocation6], %s461_s15 }
 0x1fa   : > { %s381_s30 = sshll.u32 %s232_s25, 4  ;;  %s383_s6 = sshll.u32 %s379_s23, 4  ;;  %s382_s30 = int_to_ptr.vmem [resolvable:$true] %s381_s30  ;;  %s384_s6 = int_to_ptr.hbm [resolvable:$true] %s383_s6 }
 0x1fb   : > { %s576_s8 = sshra.s32 %s384_s6, 4  ;;  %s577_s8 = int_to_ptr.hbm [resolvable:$true] %s576_s8 }
 0x1fc   : > { %s578_s22 = scalar_lea.hbm %s577_s8, 8  ;;  %p583_p3 = scmp.lt.s32.totalorder %s577_s8, %s793_s5 }
 0x1fd   : > { %p579_p0 = scmp.ne.s32.totalorder %s577_s8, %s578_s22  ;;  %p584_p4 = scmp.lt.s32.totalorder %s582_s11, %s578_s22 }
 0x1ff   : > { %p580_p1 = pnand %p579_p0, %p706_p5  ;;  %p585_p7 = por %p584_p4, %p583_p3 }
 0x201   : > { %p581_p2 = pneg %p580_p1 }
 0x203   : > { %p586_p8 = pnand %p585_p7, %p581_p2 }
 0x26b   : > { %v330_v22 = vpop.permute.xlu0 %329  ;;  %v327_v23 = vpop.permute.xlu1 %326 }
 0x26c   : > { %357 = vmatpush.msra.mxu2 %v330_v22 }
 0x26e   : > { %358 = vmatpush.msra.mxu2 %v327_v23 }
 0x270   : > { %359 = vmatpush.msra.mxu2 %v324_v21 }
 0x271   : > { %467 = vmatmul.msk.f32.vlgmr.msra.gmra.mxu2 %vm261_vm3, %v465_v24 }
 0x2f4   : > { %v361_v26 = vpop.f32.mrf.mxu2 }
 0x2f5   : > { %v362_v27 = vadd.f32 %v361_v26, %v339_v25 }
 0x2f7   : > { %v364_v28 = vmax.f32 %v362_v27, 0.0 }
 0x2f9   : > { %v365_v29 = vadd.f32 %v364_v28, %v327_v23 }
 0x2fb   : > { %367 = vst.msk [vmem:[%s232_s25] sm:$0xff] %vm366_vm4, %v365_v29 }
 0x2fc   : > { %589 = shalt.err (!%p586_p8)
}
 0x2fd   : > { %476 = dma.vmem_to_hbm [thread:$0]  (%p706_p5), %s382_s30, 128, %s384_s6, %s369_s7  }
 0x2fe PF: > { %p488_p9 = scmp.ge.s32.totalorder %s628_s21, 2  ;;  %s395_s14 = sand.u32 1, %s616_s18  }
 0x2ff   : > { %s396_s15 = scalar_lea.sflag [#allocation5], %s395_s14 }
 0x300   : > { %p483_p10 = pnand %p488_p9, %p710_p6 }
 0x302   : > { %p484_p11 = pneg %p483_p10 }
 0x304   : > { %611 = dma.done.wait (%p484_p11), %s396_s15, 128  }
 0x305   : > { %613 = vsyncadd (%p484_p11), %s396_s15, 4294967168  ;;  %p16_p12 = scmp.ge.s32.totalorder %s693_s24, 4   ;;  %s796_s18 = smov %s620_s19 }
 0x306   : > { %s797_s19 = smov %s624_s20  ;;  %s798_s20 = smov %s704_s27 }
 0x307   : > { %s799_s21 = smov %s693_s24  ;;  %18 = sbr.rel (!%p16_p12) target bundleno = 4 (0x4), region = 82 }
 0x30c   :  { %402 = vsyncpa [#allocation4], 1 }
 0x30d   :  { %404 = vsyncpa [#allocation4 + $0x1], 1 }
 0x30e   :  { %405 = vsyncpa [#allocation5], 1 }
 0x30f   :  { %407 = vsyncpa [#allocation5 + $0x1], 1 }

</bundles_post_ra>
